<compile_context>
chip_gen: v5e
topology: v5e:2x2
jax: 0.10.0
libtpu: 0.0.40
codegen_flags: <defaults>
</compile_context>

<pallas_src>
import functools

import jax
import jax.numpy as jnp
from jax import lax
from jax.experimental import pallas as pl
from jax.experimental.pallas import tpu as pltpu

WINDOW_SIZE = 16                     # options.window_size
IN_NODES = (WINDOW_SIZE - 2) * 4     # = 56
H1, H2, NCLS = 38, 20, 2
BN_EPS = 1e-5


def _round_up(n, m):
    return ((n + m - 1) // m) * m


# ---------------------------------------------------------------------------
# Kernel: one batch tile -> 3 matmuls + ReLU + log_softmax.
# ---------------------------------------------------------------------------
def motifnet_kernel(
    x_ref,    # (TILE_B, 64)   bf16   flattened input rows
    w1_ref,   # (64, 38)       bf16   conv+fc1+bn1 composed weight
    b1_ref,   # (1, 38)        f32    composed bias
    w2_ref,   # (38, 20)       bf16   fc2+bn2 composed weight
    b2_ref,   # (1, 20)        f32
    w3_ref,   # (20, 2)        bf16   output layer
    b3_ref,   # (1, 2)         f32
    o_ref,    # (TILE_B, 2)    f32    log-probabilities
):
    x = x_ref[...]                                              # bf16

    # fc1 (conv + flatten + bn1 folded in), f32 accumulate, ReLU in f32.
    h1 = jnp.dot(x, w1_ref[...], preferred_element_type=jnp.float32) + b1_ref[...]
    h1 = jnp.maximum(h1, 0.0)

    # fc2 (+bn2 folded), ReLU.
    h2 = jnp.dot(h1.astype(jnp.bfloat16), w2_ref[...],
                 preferred_element_type=jnp.float32) + b2_ref[...]
    h2 = jnp.maximum(h2, 0.0)

    # output layer + log_softmax(dim=1), done with explicit 2-column math
    # (no XLU lane reduction on a 2/128-lane vreg).
    logits = jnp.dot(h2.astype(jnp.bfloat16), w3_ref[...],
                     preferred_element_type=jnp.float32) + b3_ref[...]
    l0 = logits[:, 0:1]
    l1 = logits[:, 1:2]
    m = jnp.maximum(l0, l1)
    lse = m + jnp.log(jnp.exp(l0 - m) + jnp.exp(l1 - m))        # (TILE_B, 1)
    o_ref[...] = logits - lse


# ---------------------------------------------------------------------------
# Parameter init (torch-like raw params) and host-side composition.
# ---------------------------------------------------------------------------
def init_params(key):
    ks = jax.random.split(key, 16)
    n = lambda k, s, sc: (jax.random.normal(k, s, jnp.float32) * sc)
    return dict(
        conv_w=n(ks[0], (4, 3), 0.3),
        conv_b=n(ks[1], (1, 4), 0.1),
        w1=n(ks[2], (IN_NODES, H1), 1.0 / jnp.sqrt(IN_NODES)),
        b1=n(ks[3], (1, H1), 0.05),
        g1=1.0 + n(ks[4], (1, H1), 0.1),
        be1=n(ks[5], (1, H1), 0.1),
        m1=n(ks[6], (1, H1), 0.05),
        v1=1.0 + jnp.abs(n(ks[7], (1, H1), 0.1)),
        w2=n(ks[8], (H1, H2), 1.0 / jnp.sqrt(H1)),
        b2=n(ks[9], (1, H2), 0.05),
        g2=1.0 + n(ks[10], (1, H2), 0.1),
        be2=n(ks[11], (1, H2), 0.1),
        m2=n(ks[12], (1, H2), 0.05),
        v2=1.0 + jnp.abs(n(ks[13], (1, H2), 0.1)),
        w3=n(ks[14], (H2, NCLS), 1.0 / jnp.sqrt(H2)),
        b3=n(ks[15], (1, NCLS), 0.05),
    )


def _compose_params(params):
    """Fold conv + channel-major flatten + bn1 into fc1, and bn2 into fc2 (all in f32)."""
    L, Lout = WINDOW_SIZE, WINDOW_SIZE - 2
    cw = params["conv_w"].astype(jnp.float32)          # (4, 3)
    cb = params["conv_b"].reshape(4).astype(jnp.float32)
    w1 = params["w1"].astype(jnp.float32)               # (4*Lout, H1), channel-major rows
    b1 = params["b1"].reshape(H1).astype(jnp.float32)

    # conv[b,c,t] = sum_k x[b,t+k,c]*cw[c,k] + cb[c];  flat[b, c*Lout+t] = conv[b,c,t]
    # xflat[b, l*4+c] = x[b,l,c]  =>  W1_eff[(l,c), j] = sum_{k: 0<=l-k<Lout} cw[c,k]*w1[(c,l-k), j]
    w1_c = w1.reshape(4, Lout, H1)
    w1_eff = jnp.zeros((L, 4, H1), jnp.float32)
    for k in range(3):
        contrib = cw[:, k][:, None, None] * w1_c                 # (4, Lout, H1)
        w1_eff = w1_eff.at[k:k + Lout].add(jnp.transpose(contrib, (1, 0, 2)))
    w1_eff = w1_eff.reshape(L * 4, H1)                           # (64, 38)
    b1_eff = b1 + jnp.sum(cb[:, None, None] * w1_c, axis=(0, 1)) # conv bias through fc1

    # fold bn1 (eval: running stats)
    s1 = params["g1"].reshape(H1) * lax.rsqrt(params["v1"].reshape(H1) + BN_EPS)
    w1_eff = w1_eff * s1[None, :]
    b1_eff = b1_eff * s1 + params["be1"].reshape(H1) - params["m1"].reshape(H1) * s1

    # fold bn2 into fc2
    s2 = params["g2"].reshape(H2) * lax.rsqrt(params["v2"].reshape(H2) + BN_EPS)
    w2_eff = params["w2"].astype(jnp.float32) * s2[None, :]
    b2_eff = (params["b2"].reshape(H2) * s2
              + params["be2"].reshape(H2) - params["m2"].reshape(H2) * s2)

    return (
        w1_eff.astype(jnp.bfloat16), b1_eff.reshape(1, H1),
        w2_eff.astype(jnp.bfloat16), b2_eff.reshape(1, H2),
        params["w3"].astype(jnp.bfloat16), params["b3"].reshape(1, NCLS).astype(jnp.float32),
    )


# ---------------------------------------------------------------------------
# Wrapper: lane-dense (B, 64) layout, batch-tiled grid, weights VMEM-resident.
# ---------------------------------------------------------------------------
@functools.partial(jax.jit, static_argnames=("tile_b",))
def motifnet_forward(x, params, tile_b=1024):
    """x: (B, WINDOW_SIZE, 4) float32, mimicking the PyTorch call signature."""
    B, L, C = x.shape
    feat = L * C                                                  # 64

    w1p, b1p, w2p, b2p, w3p, b3p = _compose_params(params)

    # (B, L, 4) -> (B, 64); torch's channel-major flatten is absorbed into w1p rows.
    xflat = x.reshape(B, feat).astype(jnp.bfloat16)

    tb = min(tile_b, _round_up(B, 8))                             # multiple of 8
    b_pad = _round_up(B, tb)
    if b_pad != B:
        xflat = jnp.pad(xflat, ((0, b_pad - B), (0, 0)))

    grid = (b_pad // tb,)
    const = lambda i: (0, 0)                                      # weights resident in VMEM

    out = pl.pallas_call(
        motifnet_kernel,
        out_shape=jax.ShapeDtypeStruct((b_pad, NCLS), jnp.float32),
        grid_spec=pltpu.PrefetchScalarGridSpec(
            num_scalar_prefetch=0,
            grid=grid,
            in_specs=[
                pl.BlockSpec((tb, feat), lambda i: (i, 0)),       # x tile (pipelined)
                pl.BlockSpec((feat, H1), const),
                pl.BlockSpec((1, H1), const),
                pl.BlockSpec((H1, H2), const),
                pl.BlockSpec((1, H2), const),
                pl.BlockSpec((H2, NCLS), const),
                pl.BlockSpec((1, NCLS), const),
            ],
            out_specs=pl.BlockSpec((tb, NCLS), lambda i: (i, 0)),
        ),
        compiler_params=pltpu.CompilerParams(
            dimension_semantics=("parallel",),                    # shard batch tiles across TCs (v7x)
        ),
    )(xflat, w1p, b1p, w2p, b2p, w3p, b3p)

    return out[:B]


# ---------------------------------------------------------------------------
# Pure-JAX reference (eval-mode PyTorch semantics) for a correctness check.
# ---------------------------------------------------------------------------
def motifnet_reference(x, params):
    x_cf = jnp.transpose(x, (0, 2, 1)).astype(jnp.float32)        # (B, 4, L)
    Lout = x.shape[1] - 2
    cw, cb = params["conv_w"], params["conv_b"].reshape(4)
    conv = jnp.stack(
        [x_cf[:, c, 0:Lout] * cw[c, 0]
         + x_cf[:, c, 1:1 + Lout] * cw[c, 1]
         + x_cf[:, c, 2:2 + Lout] * cw[c, 2] + cb[c] for c in range(4)],
        axis=1)                                                   # (B, 4, Lout)
    flat = conv.reshape(x.shape[0], -1)
    h1 = flat @ params["w1"] + params["b1"]
    h1 = (h1 - params["m1"]) * lax.rsqrt(params["v1"] + BN_EPS) * params["g1"] + params["be1"]
    h1 = jnp.maximum(h1, 0.0)
    h2 = h1 @ params["w2"] + params["b2"]
    h2 = (h2 - params["m2"]) * lax.rsqrt(params["v2"] + BN_EPS) * params["g2"] + params["be2"]
    h2 = jnp.maximum(h2, 0.0)
    logits = h2 @ params["w3"] + params["b3"]
    return jax.nn.log_softmax(logits, axis=1)


if __name__ == "__main__":
    key = jax.random.PRNGKey(0)
    k_x, k_p = jax.random.split(key)
    B = 8
    # Input matching the module's expectation: (batch, window_size, 4) one-hot-ish features.
    x = jax.random.uniform(k_x, (B, WINDOW_SIZE, 4), jnp.float32)
    params = init_params(k_p)

    out = motifnet_forward(x, params)
    out = jax.block_until_ready(out)
    assert out.shape == (B, NCLS)
    assert bool(jnp.all(jnp.isfinite(out)))

    ref = motifnet_reference(x, params)
    max_err = float(jnp.max(jnp.abs(out - ref)))
    assert max_err < 3e-2, f"max abs error vs reference: {max_err}"

    print("KERNEL_OK")
</pallas_src>

<mosaic_0001>
module attributes {stable_mosaic.version = 11 : i64} {
  func.func @motifnet_kernel(%arg0: i32, %arg1: memref<8x64xbf16, #tpu.memory_space<vmem>>, %arg2: memref<64x38xbf16, #tpu.memory_space<vmem>>, %arg3: memref<1x38xf32, #tpu.memory_space<vmem>>, %arg4: memref<38x20xbf16, #tpu.memory_space<vmem>>, %arg5: memref<1x20xf32, #tpu.memory_space<vmem>>, %arg6: memref<20x2xbf16, #tpu.memory_space<vmem>>, %arg7: memref<1x2xf32, #tpu.memory_space<vmem>>, %arg8: memref<8x2xf32, #tpu.memory_space<vmem>>) attributes {dimension_semantics = [#tpu.dimension_semantics<parallel>], iteration_bounds = array<i64: 1>, scalar_prefetch = 0 : i64, scratch_operands = 0 : i64, tpu.core_type = #tpu.core_type<tc>, window_params = [{transform_indices = @transform_0, window_bounds = array<i64: 8, 64>}, {pipeline_mode = #tpu.pipeline_mode<synchronous>, transform_indices = @transform_1, window_bounds = array<i64: 64, 38>}, {pipeline_mode = #tpu.pipeline_mode<synchronous>, transform_indices = @transform_2, window_bounds = array<i64: 1, 38>}, {pipeline_mode = #tpu.pipeline_mode<synchronous>, transform_indices = @transform_3, window_bounds = array<i64: 38, 20>}, {pipeline_mode = #tpu.pipeline_mode<synchronous>, transform_indices = @transform_4, window_bounds = array<i64: 1, 20>}, {pipeline_mode = #tpu.pipeline_mode<synchronous>, transform_indices = @transform_5, window_bounds = array<i64: 20, 2>}, {pipeline_mode = #tpu.pipeline_mode<synchronous>, transform_indices = @transform_6, window_bounds = array<i64: 1, 2>}, {transform_indices = @transform_7, window_bounds = array<i64: 8, 2>}]} {
    %c0 = arith.constant 0 : index
    %c0_0 = arith.constant 0 : index
    %0 = vector.load %arg1[%c0, %c0_0] : memref<8x64xbf16, #tpu.memory_space<vmem>>, vector<8x64xbf16>
    %c0_1 = arith.constant 0 : index
    %c0_2 = arith.constant 0 : index
    %1 = vector.load %arg2[%c0_1, %c0_2] : memref<64x38xbf16, #tpu.memory_space<vmem>>, vector<64x38xbf16>
    %cst = arith.constant dense<0.000000e+00> : vector<8x38xf32>
    %2 = tpu.matmul %0, %1, %cst {dimension_numbers = #tpu.dot_dimension_numbers<[1], [0], [0], [1], [0, 0, 1, 1], [], []>} : vector<8x64xbf16>, vector<64x38xbf16>, vector<8x38xf32> -> vector<8x38xf32>
    %c0_3 = arith.constant 0 : index
    %c0_4 = arith.constant 0 : index
    %3 = vector.load %arg3[%c0_3, %c0_4] : memref<1x38xf32, #tpu.memory_space<vmem>>, vector<1x38xf32>
    %4 = vector.broadcast %3 : vector<1x38xf32> to vector<8x38xf32>
    %5 = arith.addf %2, %4 : vector<8x38xf32>
    %cst_5 = arith.constant 0.000000e+00 : f32
    %6 = vector.broadcast %cst_5 : f32 to vector<8x38xf32>
    %7 = arith.maximumf %5, %6 : vector<8x38xf32>
    %8 = arith.truncf %7 : vector<8x38xf32> to vector<8x38xbf16>
    %c0_6 = arith.constant 0 : index
    %c0_7 = arith.constant 0 : index
    %9 = vector.load %arg4[%c0_6, %c0_7] : memref<38x20xbf16, #tpu.memory_space<vmem>>, vector<38x20xbf16>
    %cst_8 = arith.constant dense<0.000000e+00> : vector<8x20xf32>
    %10 = tpu.matmul %8, %9, %cst_8 {dimension_numbers = #tpu.dot_dimension_numbers<[1], [0], [0], [1], [0, 0, 1, 1], [], []>} : vector<8x38xbf16>, vector<38x20xbf16>, vector<8x20xf32> -> vector<8x20xf32>
    %c0_9 = arith.constant 0 : index
    %c0_10 = arith.constant 0 : index
    %11 = vector.load %arg5[%c0_9, %c0_10] : memref<1x20xf32, #tpu.memory_space<vmem>>, vector<1x20xf32>
    %12 = vector.broadcast %11 : vector<1x20xf32> to vector<8x20xf32>
    %13 = arith.addf %10, %12 : vector<8x20xf32>
    %cst_11 = arith.constant 0.000000e+00 : f32
    %14 = vector.broadcast %cst_11 : f32 to vector<8x20xf32>
    %15 = arith.maximumf %13, %14 : vector<8x20xf32>
    %16 = arith.truncf %15 : vector<8x20xf32> to vector<8x20xbf16>
    %c0_12 = arith.constant 0 : index
    %c0_13 = arith.constant 0 : index
    %17 = vector.load %arg6[%c0_12, %c0_13] : memref<20x2xbf16, #tpu.memory_space<vmem>>, vector<20x2xbf16>
    %cst_14 = arith.constant dense<0.000000e+00> : vector<8x2xf32>
    %18 = tpu.matmul %16, %17, %cst_14 {dimension_numbers = #tpu.dot_dimension_numbers<[1], [0], [0], [1], [0, 0, 1, 1], [], []>} : vector<8x20xbf16>, vector<20x2xbf16>, vector<8x2xf32> -> vector<8x2xf32>
    %c0_15 = arith.constant 0 : index
    %c0_16 = arith.constant 0 : index
    %19 = vector.load %arg7[%c0_15, %c0_16] : memref<1x2xf32, #tpu.memory_space<vmem>>, vector<1x2xf32>
    %20 = vector.broadcast %19 : vector<1x2xf32> to vector<8x2xf32>
    %21 = arith.addf %18, %20 : vector<8x2xf32>
    %22 = vector.extract_strided_slice %21 {offsets = [0, 0], sizes = [8, 1], strides = [1, 1]} : vector<8x2xf32> to vector<8x1xf32>
    %23 = vector.extract_strided_slice %21 {offsets = [0, 1], sizes = [8, 1], strides = [1, 1]} : vector<8x2xf32> to vector<8x1xf32>
    %24 = arith.maximumf %22, %23 : vector<8x1xf32>
    %25 = arith.subf %22, %24 : vector<8x1xf32>
    %26 = math.exp %25 : vector<8x1xf32>
    %27 = arith.subf %23, %24 : vector<8x1xf32>
    %28 = math.exp %27 : vector<8x1xf32>
    %29 = arith.addf %26, %28 : vector<8x1xf32>
    %30 = math.log %29 : vector<8x1xf32>
    %31 = arith.addf %24, %30 : vector<8x1xf32>
    %32 = vector.broadcast %31 : vector<8x1xf32> to vector<8x2xf32>
    %33 = arith.subf %21, %32 : vector<8x2xf32>
    %c0_17 = arith.constant 0 : index
    %c0_18 = arith.constant 0 : index
    %34 = vector.load %arg8[%c0_17, %c0_18] : memref<8x2xf32, #tpu.memory_space<vmem>>, vector<8x2xf32>
    tpu.vector_store %arg8[%c0_17, %c0_18], %33 {strides = array<i32>} : memref<8x2xf32, #tpu.memory_space<vmem>>, vector<8x2xf32>,
    return
  }
  func.func @transform_0(%arg0: i32) -> (i32, i32) {
    %c0_i32 = arith.constant 0 : i32
    %c0_i32_0 = arith.constant 0 : i32
    return %arg0, %c0_i32 : i32, i32
  }
  func.func @transform_1(%arg0: i32) -> (i32, i32) {
    %c0_i32 = arith.constant 0 : i32
    %c0_i32_0 = arith.constant 0 : i32
    %c0_i32_1 = arith.constant 0 : i32
    return %c0_i32, %c0_i32_0 : i32, i32
  }
  func.func @transform_2(%arg0: i32) -> (i32, i32) {
    %c0_i32 = arith.constant 0 : i32
    %c0_i32_0 = arith.constant 0 : i32
    %c0_i32_1 = arith.constant 0 : i32
    return %c0_i32, %c0_i32_0 : i32, i32
  }
  func.func @transform_3(%arg0: i32) -> (i32, i32) {
    %c0_i32 = arith.constant 0 : i32
    %c0_i32_0 = arith.constant 0 : i32
    %c0_i32_1 = arith.constant 0 : i32
    return %c0_i32, %c0_i32_0 : i32, i32
  }
  func.func @transform_4(%arg0: i32) -> (i32, i32) {
    %c0_i32 = arith.constant 0 : i32
    %c0_i32_0 = arith.constant 0 : i32
    %c0_i32_1 = arith.constant 0 : i32
    return %c0_i32, %c0_i32_0 : i32, i32
  }
  func.func @transform_5(%arg0: i32) -> (i32, i32) {
    %c0_i32 = arith.constant 0 : i32
    %c0_i32_0 = arith.constant 0 : i32
    %c0_i32_1 = arith.constant 0 : i32
    return %c0_i32, %c0_i32_0 : i32, i32
  }
  func.func @transform_6(%arg0: i32) -> (i32, i32) {
    %c0_i32 = arith.constant 0 : i32
    %c0_i32_0 = arith.constant 0 : i32
    %c0_i32_1 = arith.constant 0 : i32
    return %c0_i32, %c0_i32_0 : i32, i32
  }
  func.func @transform_7(%arg0: i32) -> (i32, i32) {
    %c0_i32 = arith.constant 0 : i32
    %c0_i32_0 = arith.constant 0 : i32
    return %arg0, %c0_i32 : i32, i32
  }
}

</mosaic_0001>

<bundles_post_ra>
// kernel: motifnet_forward.1
= control target key start
LH: loop header
LB: loop body
LE: loop exit
PB: predicated region body
PF: predicated region fallthrough
CT: control target
= control target key end

     0   :  { %vm111_vm0 = vcmask 1042432   ;;  %vm64_vm1 = vcmask 523264   ;;  %vm107_vm2 = vcmask 310272   ;;  %vm150_vm3 = vcmask 1041408   ;;  %s254_s23 = smov 127   ;;  %s339_s1 = inlined_call_operand.vmem [shape: bf16[64,38], index: 1, kind: input, shape index: {}]   ;;  %s340_s3 = inlined_call_operand.vmem [shape: bf16[38,20], index: 3, kind: input, shape index: {}]   ;;  %s341_s2 = inlined_call_operand.vmem [shape: f32[1,38], index: 2, kind: input, shape index: {}]   ;;  %s342_s0 = inlined_call_operand.vmem [shape: bf16[8,64], index: 0, kind: input, shape index: {}]   ;;  %s343_s4 = inlined_call_operand.vmem [shape: f32[1,20], index: 4, kind: input, shape index: {}]   ;;  %s344_s6 = inlined_call_operand.vmem [shape: f32[1,2], index: 6, kind: input, shape index: {}]   ;;  %s345_s5 = inlined_call_operand.vmem [shape: bf16[20,2], index: 5, kind: input, shape index: {}]   ;;  %s346_s7 = inlined_call_operand.vmem [shape: f32[8,2], index: 7, kind: output, shape index: {}]  }
   0x1   :  { %v236_v0 = vld [vmem:[%s339_s1 + $0x18] sm:$0xff]  ;;  %v87_v1 = vld [vmem:[%s340_s3 + $0x10] sm:$0x7]  ;;  %v234_v5 = vld [vmem:[%s339_s1 + $0x8] sm:$0xff]  ;;  %vm146_vm4 = vcmask 162816   ;;  %v256_v38 = vmov 0  }
   0x2   :  { %72 = vmatpush.bf16.msra.mxu0 %v236_v0  ;;  %v235_v2 = vld [vmem:[%s339_s1 + $0x10] sm:$0xff]  ;;  %v101_v3 = vunpack.c.l.b16 %v87_v1  ;;  %v233_v7 = vld [vmem:[%s339_s1] sm:$0xff]  ;;  %v238_v9 = vld [vmem:[%s340_s3 + $0x8] sm:$0xff]  ;;  %243 = vset.pattern.permute.xlu1 %v256_v38  ;;  %vm196_vm5 = vcmask 15360  }
   0x3   :  { %v27_v8 = vld [vmem:[%s342_s0] sm:$0xf]  ;;  %v132_v17 = vld [vmem:[%s345_s5 + $0x8] sm:$0x3]  ;;  %244 = vset.pattern.permute.xlu0 %v256_v38 }
   0x4   :  { %v104_v4 = vpack.c.b16 %v101_v3, %v101_v3  ;;  %v237_v10 = vld [vmem:[%s340_s3] sm:$0xff]  ;;  %v142_v18 = vunpack.c.l.b16 %v132_v17 }
   0x5   :  { %v245_v11 = vld [vmem:[%s341_s2] ss:$0 sm:$0xff] }
   0x6   :  { %73 = vmatpush.bf16.msra.mxu0 %v235_v2  ;;  %v113_v6 = vsel %vm111_vm0, %v104_v4, 0  ;;  %v144_v19 = vpack.c.b16 %v142_v18, %v142_v18  ;;  %v239_v21 = vld [vmem:[%s345_s5] sm:$0xff]  ;;  %s255_s5 = smov 1  }
   0x7   :  { %120 = vmatpush.bf16.msra.mxu1 %v113_v6  ;;  %v246_v22 = vld [vmem:[%s343_s4] ss:$0 sm:$0xff] }
   0x8   :  { %v152_v20 = vsel %vm150_vm3, %v144_v19, 0  ;;  %v247_v28 = vld [vmem:[%s344_s6] ss:$0 sm:$0xff] }
   0x9   :  { %160 = vmatpush.bf16.msra.mxu2 %v152_v20 }
   0xa   :  { %74 = vmatpush.bf16.msra.mxu0 %v234_v5 }
   0xb   :  { %121 = vmatpush.bf16.msra.mxu1 %v238_v9 }
   0xd   :  { %161 = vmatpush.bf16.msra.mxu2 %v239_v21 }
   0xe   :  { %75 = vmatpush.bf16.msra.mxu0 %v233_v7 }
   0xf   :  { %122 = vmatpush.bf16.msra.mxu1 %v237_v10 }
  0x11   :  { %218 = vmatmul.msk.bf16.vlgmr.msra.gmra.mxu0 %vm64_vm1, %v27_v8 }
  0x8e   :  { %v77_v12 = vpop.f32.mrf.mxu0 }
  0x8f   :  { %v78_v13 = vadd.f32 %v245_v11, %v77_v12 }
  0x91   :  { %v81_v14 = vmax.f32 %v78_v13, 0.0 }
  0x93   :  { %v82_v15 = vpack.c.bf16 %v81_v14, %v81_v14 }
  0x95   :  { %227 = vmatmul.msk.bf16.vlgmr.msra.gmra.mxu1 %vm107_vm2, %v82_v15 }
  0x96   :  { %v79_v16 = vpop.f32.mrf.mxu0 }
 0x112   :  { %v124_v23 = vpop.f32.mrf.mxu1 }
 0x113   :  { %v125_v24 = vadd.f32 %v246_v22, %v124_v23 }
 0x115   :  { %v128_v25 = vmax.f32 %v125_v24, 0.0 }
 0x117   :  { %v129_v26 = vpack.c.bf16 %v128_v25, %v128_v25 }
 0x119   :  { %232 = vmatmul.msk.bf16.vlgmr.msra.gmra.mxu2 %vm146_vm4, %v129_v26 }
 0x11a   :  { %v126_v27 = vpop.f32.mrf.mxu1 }
 0x19c   :  { %v163_v29 = vpop.f32.mrf.mxu2 }
 0x19d   :  { %v164_v30 = vadd.f32 %v247_v28, %v163_v29 }
 0x19f   :  { %168 = vrot.lane.b32.xlu0 %v164_v30, %s254_s23 }
 0x1a4   :  { %v165_v31 = vpop.f32.mrf.mxu2 }
 0x211   :  { %v169_v32 = vpop.permute.xlu0 %168 }
 0x212   :  { %v171_v33 = vmax.f32 %v164_v30, %v169_v32 }
 0x214   :  { %176 = vrot.lane.b32.xlu0 %v171_v33, %s255_s5  ;;  %v172_v39 = vsub.f32 %v164_v30, %v171_v33 }
 0x216   :  { %v173_v40 = vmul.f32 1.442695, %v172_v39 }
 0x286   :  { %v177_v34 = vpop.permute.xlu0 %176 }
 0x287   :  { %v179_v35 = vsub.f32 %v164_v30, %v177_v34 }
 0x289   :  { %v180_v36 = vmul.f32 1.442695, %v179_v35 }
 0x28b   :  { %248 = vpow2.f32 %v180_v36 }
 0x28c   :  { %250 = vpow2.f32 %v173_v40 }
 0x291   :  { %v249_v37 = vpop.eup %248 }
 0x292   :  { %183 = vrot.lane.b32.xlu1 %v249_v37, %s254_s23  ;;  %v251_v41 = vpop.eup %250 }
 0x304   :  { %v184_v42 = vpop.permute.xlu1 %183 }
 0x305   :  { %v186_v43 = vadd.f32 %v251_v41, %v184_v42 }
 0x307   :  { %252 = vlog2.f32 %v186_v43 }
 0x30d   :  { %v253_v44 = vpop.eup %252 }
 0x30e   :  { %v188_v45 = vmul.f32 0.6931472, %v253_v44 }
 0x310   :  { %v189_v46 = vadd.f32 %v188_v45, %v171_v33 }
 0x312   :  { %192 = vperm.xlu1 %243, %v189_v46  }
 0x384   :  { %v193_v47 = vpop.permute.xlu1 %192 }
 0x385   :  { %v195_v48 = vsub.f32 %v164_v30, %v193_v47 }
 0x387   :  { %197 = vst.msk [vmem:[%s346_s7] sm:$0xff] %vm196_vm5, %v195_v48 }

</bundles_post_ra>
